<compile_context>
chip_gen: v5e
topology: v5e:2x2
jax: 0.10.0
libtpu: 0.0.40
codegen_flags: <defaults>
</compile_context>

<pallas_src>
import functools

import jax
import jax.numpy as jnp
from jax import lax
from jax.experimental import pallas as pl
from jax.experimental.pallas import tpu as pltpu


# ------------------------------ fused kernel ------------------------------- #

def _cross_attn_fused_kernel(vq_ref, x_ref, wq_ref, wk_ref, wv_ref, wp_ref,
                             bp_ref, o_ref, cat_ref, *, num_heads, scale):
    """One grid step == one batch element.  All intermediates live in VMEM."""
    N_a = vq_ref.shape[1]
    C = wq_ref.shape[1]
    hd = C // num_heads
    cdt = vq_ref.dtype                    # native compute dtype (bf16 -> bf16 MXU)
    f32 = jnp.float32

    vq = vq_ref[0]                        # (N_a, C), no upcast
    xx = x_ref[0]                         # (N_i, C), no upcast

    # Projections on the MXU in the native dtype, f32 accumulation.
    q = jnp.dot(vq, wq_ref[...], preferred_element_type=f32)     # (N_a, C) f32
    k = jnp.dot(xx, wk_ref[...], preferred_element_type=f32)     # (N_i, C) f32
    v = jnp.dot(xx, wv_ref[...], preferred_element_type=f32)     # (N_i, C) f32

    # Fold the softmax scale into q once, then drop back to the compute dtype.
    q = (q * scale).astype(cdt)
    k = k.astype(cdt)
    v = v.astype(cdt)

    # Per-head attention; each head output is written (lane-concatenated) into
    # the (N_a, C) scratch so ONE full-depth K=C output projection runs after.
    # TODO(synk): at production sizes (head_dim >= 128) replace the per-head
    # lane slices with a single head-batched dot_general to avoid relayouts.
    for h in range(num_heads):                                    # static unroll
        lo = h * hd
        qh = q[:, lo:lo + hd]                                     # (N_a, hd)
        kh = k[:, lo:lo + hd]                                     # (N_i, hd)
        vh = v[:, lo:lo + hd]                                     # (N_i, hd)

        # s = qh @ kh^T without an explicit transpose (contract last dims).
        s = lax.dot_general(qh, kh,
                            dimension_numbers=(((1,), (1,)), ((), ())),
                            preferred_element_type=f32)           # (N_a, N_i)

        # Numerically-stable softmax, exact normalization.
        s = s - jnp.max(s, axis=-1, keepdims=True)
        p = jnp.exp(s)
        p = p / jnp.sum(p, axis=-1, keepdims=True)

        oh = jnp.dot(p.astype(cdt), vh, preferred_element_type=f32)   # (N_a, hd)
        cat_ref[:, lo:lo + hd] = oh.astype(cat_ref.dtype)

    # Single full-K output projection + bias (heads already concatenated).
    out = jnp.dot(cat_ref[...], wp_ref[...], preferred_element_type=f32)
    o_ref[0] = (out + bp_ref[...].astype(f32)).astype(o_ref.dtype)


# ------------------------------ Pallas wrapper ----------------------------- #

def custom_cross_attention_forward(var_query, x, params, num_heads):
    """Replicates CustomCrossAttention.forward (tensor_par_size=1, drops=0)."""
    B, N_a, C = var_query.shape
    _, N_i, _ = x.shape
    head_dim = C // num_heads
    scale = head_dim ** -0.5
    dt = var_query.dtype

    # Split the fused kv weight once outside the kernel: removes the (N_i, 2C)
    # kv intermediate and its two lane-slice copies from VMEM.
    wq = params["wq"]
    wk = params["wkv"][:, :C]
    wv = params["wkv"][:, C:]
    wp = params["wp"]
    bp = params["bp"]

    kern = functools.partial(_cross_attn_fused_kernel,
                             num_heads=num_heads, scale=scale)

    flops = 2 * B * (2 * N_a * C * C        # q proj + out proj
                     + 2 * N_i * C * C      # k, v proj
                     + 2 * N_a * N_i * C)   # scores + pv over all heads
    itemsize = jnp.dtype(dt).itemsize
    bytes_accessed = int(
        (var_query.size + x.size + B * N_a * C) * itemsize
        + (wq.size + wk.size + wv.size + wp.size + bp.size)
        * jnp.dtype(wq.dtype).itemsize)
    cost = pl.CostEstimate(flops=int(flops),
                           transcendentals=int(B * num_heads * N_a * N_i),
                           bytes_accessed=bytes_accessed)

    return pl.pallas_call(
        kern,
        out_shape=jax.ShapeDtypeStruct((B, N_a, C), dt),
        grid=(B,),
        in_specs=[
            pl.BlockSpec((1, N_a, C), lambda b: (b, 0, 0)),     # var_query
            pl.BlockSpec((1, N_i, C), lambda b: (b, 0, 0)),     # x
            pl.BlockSpec((C, C),      lambda b: (0, 0)),        # wq  (resident)
            pl.BlockSpec((C, C),      lambda b: (0, 0)),        # wk  (resident)
            pl.BlockSpec((C, C),      lambda b: (0, 0)),        # wv  (resident)
            pl.BlockSpec((C, C),      lambda b: (0, 0)),        # wp  (resident)
            pl.BlockSpec((1, C),      lambda b: (0, 0)),        # bp  (resident)
        ],
        out_specs=pl.BlockSpec((1, N_a, C), lambda b: (b, 0, 0)),
        scratch_shapes=[pltpu.VMEM((N_a, C), dt)],              # head-concat buffer
        compiler_params=pltpu.CompilerParams(
            dimension_semantics=("parallel",),                  # megacore over batch
            vmem_limit_bytes=32 * 1024 * 1024),
        cost_estimate=cost,
    )(var_query, x, wq, wk, wv, wp, bp)


# ---------------------------- pure-JAX reference --------------------------- #

def reference_forward(var_query, x, params, num_heads):
    B, N_a, C = var_query.shape
    _, N_i, _ = x.shape
    hd = C // num_heads
    scale = hd ** -0.5
    q = (var_query @ params["wq"]).reshape(B, N_a, num_heads, hd).transpose(0, 2, 1, 3)
    kv = (x @ params["wkv"]).reshape(B, N_i, 2, num_heads, hd).transpose(2, 0, 3, 1, 4)
    k, v = kv[0], kv[1]
    attn = jnp.einsum("bhqd,bhkd->bhqk", q, k) * scale
    attn = jax.nn.softmax(attn, axis=-1)
    o = jnp.einsum("bhqk,bhkd->bhqd", attn, v).transpose(0, 2, 1, 3).reshape(B, N_a, C)
    return o @ params["wp"] + params["bp"]


# ----------------------------------- main ----------------------------------- #

if __name__ == "__main__":
    B, N_a, N_i, C, num_heads = 2, 8, 16, 32, 8   # head_dim = 4

    key = jax.random.PRNGKey(0)
    k_q, k_kv, k_p, k_pb, k_vq, k_x = jax.random.split(key, 6)

    # Weights stored as (in, out) so the forward is x @ W
    # (equivalent to torch's x @ weight.T with weight=(out, in)).
    params = {
        "wq":  jax.random.normal(k_q,  (C, C),     jnp.float32) * 0.02,
        "wkv": jax.random.normal(k_kv, (C, 2 * C), jnp.float32) * 0.02,
        "wp":  jax.random.normal(k_p,  (C, C),     jnp.float32) * 0.02,
        "bp":  jax.random.normal(k_pb, (1, C),     jnp.float32) * 0.02,
    }

    var_query = jax.random.normal(k_vq, (B, N_a, C), jnp.float32)
    x = jax.random.normal(k_x, (B, N_i, C), jnp.float32)

    fwd = jax.jit(custom_cross_attention_forward, static_argnames="num_heads")

    # ---- f32 path (matches the PyTorch module's default dtype) ----
    out = jax.block_until_ready(fwd(var_query, x, params, num_heads))
    ref = reference_forward(var_query, x, params, num_heads)
    assert out.shape == (B, N_a, C)
    assert jnp.allclose(out, ref, atol=1e-4, rtol=1e-4), "f32 mismatch vs reference"

    # ---- bf16 path (native MXU dtype, per perf feedback) ----
    params_bf = {k: v.astype(jnp.bfloat16) for k, v in params.items()}
    vq_bf = var_query.astype(jnp.bfloat16)
    x_bf = x.astype(jnp.bfloat16)
    out_bf = jax.block_until_ready(fwd(vq_bf, x_bf, params_bf, num_heads))
    ref_bf = reference_forward(vq_bf.astype(jnp.float32), x_bf.astype(jnp.float32),
                               {k: v.astype(jnp.float32) for k, v in params_bf.items()},
                               num_heads)
    assert out_bf.dtype == jnp.bfloat16 and out_bf.shape == (B, N_a, C)
    assert jnp.allclose(out_bf.astype(jnp.float32), ref_bf, atol=1e-2, rtol=1e-1), \
        "bf16 mismatch vs reference"

    print("KERNEL_OK")
</pallas_src>

<mosaic_0001>
module attributes {stable_mosaic.version = 11 : i64} {
  func.func @_cross_attn_fused_kernel(%arg0: i32, %arg1: memref<1x8x32xf32, #tpu.memory_space<vmem>>, %arg2: memref<1x16x32xf32, #tpu.memory_space<vmem>>, %arg3: memref<32x32xf32, #tpu.memory_space<vmem>>, %arg4: memref<32x32xf32, #tpu.memory_space<vmem>>, %arg5: memref<32x32xf32, #tpu.memory_space<vmem>>, %arg6: memref<32x32xf32, #tpu.memory_space<vmem>>, %arg7: memref<1x32xf32, #tpu.memory_space<vmem>>, %arg8: memref<1x8x32xf32, #tpu.memory_space<vmem>>, %arg9: memref<8x32xf32, #tpu.memory_space<vmem>>) attributes {dimension_semantics = [#tpu.dimension_semantics<parallel>], iteration_bounds = array<i64: 2>, scalar_prefetch = 0 : i64, scratch_operands = 1 : i64, tpu.core_type = #tpu.core_type<tc>, window_params = [{transform_indices = @transform_0, window_bounds = array<i64: 1, 8, 32>}, {transform_indices = @transform_1, window_bounds = array<i64: 1, 16, 32>}, {pipeline_mode = #tpu.pipeline_mode<synchronous>, transform_indices = @transform_2, window_bounds = array<i64: 32, 32>}, {pipeline_mode = #tpu.pipeline_mode<synchronous>, transform_indices = @transform_3, window_bounds = array<i64: 32, 32>}, {pipeline_mode = #tpu.pipeline_mode<synchronous>, transform_indices = @transform_4, window_bounds = array<i64: 32, 32>}, {pipeline_mode = #tpu.pipeline_mode<synchronous>, transform_indices = @transform_5, window_bounds = array<i64: 32, 32>}, {pipeline_mode = #tpu.pipeline_mode<synchronous>, transform_indices = @transform_6, window_bounds = array<i64: 1, 32>}, {transform_indices = @transform_7, window_bounds = array<i64: 1, 8, 32>}]} {
    %c0 = arith.constant 0 : index
    %c0_0 = arith.constant 0 : index
    %c0_1 = arith.constant 0 : index
    %0 = vector.load %arg1[%c0, %c0_0, %c0_1] : memref<1x8x32xf32, #tpu.memory_space<vmem>>, vector<1x8x32xf32>
    %1 = vector.shape_cast %0 : vector<1x8x32xf32> to vector<8x32xf32>
    %c0_2 = arith.constant 0 : index
    %c0_3 = arith.constant 0 : index
    %c0_4 = arith.constant 0 : index
    %2 = vector.load %arg2[%c0_2, %c0_3, %c0_4] : memref<1x16x32xf32, #tpu.memory_space<vmem>>, vector<1x16x32xf32>
    %3 = vector.shape_cast %2 : vector<1x16x32xf32> to vector<16x32xf32>
    %c0_5 = arith.constant 0 : index
    %c0_6 = arith.constant 0 : index
    %4 = vector.load %arg3[%c0_5, %c0_6] : memref<32x32xf32, #tpu.memory_space<vmem>>, vector<32x32xf32>
    %cst = arith.constant dense<0.000000e+00> : vector<8x32xf32>
    %5 = tpu.matmul %1, %4, %cst {dimension_numbers = #tpu.dot_dimension_numbers<[1], [0], [0], [1], [0, 0, 1, 1], [], []>} : vector<8x32xf32>, vector<32x32xf32>, vector<8x32xf32> -> vector<8x32xf32>
    %c0_7 = arith.constant 0 : index
    %c0_8 = arith.constant 0 : index
    %6 = vector.load %arg4[%c0_7, %c0_8] : memref<32x32xf32, #tpu.memory_space<vmem>>, vector<32x32xf32>
    %cst_9 = arith.constant dense<0.000000e+00> : vector<16x32xf32>
    %7 = tpu.matmul %3, %6, %cst_9 {dimension_numbers = #tpu.dot_dimension_numbers<[1], [0], [0], [1], [0, 0, 1, 1], [], []>} : vector<16x32xf32>, vector<32x32xf32>, vector<16x32xf32> -> vector<16x32xf32>
    %c0_10 = arith.constant 0 : index
    %c0_11 = arith.constant 0 : index
    %8 = vector.load %arg5[%c0_10, %c0_11] : memref<32x32xf32, #tpu.memory_space<vmem>>, vector<32x32xf32>
    %cst_12 = arith.constant dense<0.000000e+00> : vector<16x32xf32>
    %9 = tpu.matmul %3, %8, %cst_12 {dimension_numbers = #tpu.dot_dimension_numbers<[1], [0], [0], [1], [0, 0, 1, 1], [], []>} : vector<16x32xf32>, vector<32x32xf32>, vector<16x32xf32> -> vector<16x32xf32>
    %cst_13 = arith.constant 5.000000e-01 : f32
    %10 = vector.broadcast %cst_13 : f32 to vector<8x32xf32>
    %11 = arith.mulf %5, %10 : vector<8x32xf32>
    %12 = vector.extract_strided_slice %11 {offsets = [0, 0], sizes = [8, 4], strides = [1, 1]} : vector<8x32xf32> to vector<8x4xf32>
    %13 = vector.extract_strided_slice %7 {offsets = [0, 0], sizes = [16, 4], strides = [1, 1]} : vector<16x32xf32> to vector<16x4xf32>
    %14 = vector.extract_strided_slice %9 {offsets = [0, 0], sizes = [16, 4], strides = [1, 1]} : vector<16x32xf32> to vector<16x4xf32>
    %cst_14 = arith.constant dense<0.000000e+00> : vector<8x16xf32>
    %15 = tpu.matmul %12, %13, %cst_14 {dimension_numbers = #tpu.dot_dimension_numbers<[1], [1], [0], [0], [0, 0, 1, 0], [], []>} : vector<8x4xf32>, vector<16x4xf32>, vector<8x16xf32> -> vector<8x16xf32>
    %cst_15 = arith.constant dense<0xFF800000> : vector<8xf32>
    %16 = vector.multi_reduction <maximumf>, %15, %cst_15 [1] : vector<8x16xf32> to vector<8xf32>
    %17 = vector.shape_cast %16 : vector<8xf32> to vector<8x1xf32>
    %18 = vector.broadcast %17 : vector<8x1xf32> to vector<8x16xf32>
    %19 = arith.subf %15, %18 : vector<8x16xf32>
    %20 = math.exp %19 : vector<8x16xf32>
    %cst_16 = arith.constant dense<0.000000e+00> : vector<8xf32>
    %21 = vector.multi_reduction <add>, %20, %cst_16 [1] : vector<8x16xf32> to vector<8xf32>
    %22 = vector.shape_cast %21 : vector<8xf32> to vector<8x1xf32>
    %23 = vector.broadcast %22 : vector<8x1xf32> to vector<8x16xf32>
    %24 = arith.divf %20, %23 : vector<8x16xf32>
    %cst_17 = arith.constant dense<0.000000e+00> : vector<8x4xf32>
    %25 = tpu.matmul %24, %14, %cst_17 {dimension_numbers = #tpu.dot_dimension_numbers<[1], [0], [0], [1], [0, 0, 1, 1], [], []>} : vector<8x16xf32>, vector<16x4xf32>, vector<8x4xf32> -> vector<8x4xf32>
    %c0_18 = arith.constant 0 : index
    %c0_19 = arith.constant 0 : index
    %26 = vector.load %arg9[%c0_18, %c0_19] : memref<8x32xf32, #tpu.memory_space<vmem>>, vector<8x4xf32>
    tpu.vector_store %arg9[%c0_18, %c0_19], %25 {strides = array<i32>} : memref<8x32xf32, #tpu.memory_space<vmem>>, vector<8x4xf32>,
    %27 = vector.extract_strided_slice %11 {offsets = [0, 4], sizes = [8, 4], strides = [1, 1]} : vector<8x32xf32> to vector<8x4xf32>
    %28 = vector.extract_strided_slice %7 {offsets = [0, 4], sizes = [16, 4], strides = [1, 1]} : vector<16x32xf32> to vector<16x4xf32>
    %29 = vector.extract_strided_slice %9 {offsets = [0, 4], sizes = [16, 4], strides = [1, 1]} : vector<16x32xf32> to vector<16x4xf32>
    %cst_20 = arith.constant dense<0.000000e+00> : vector<8x16xf32>
    %30 = tpu.matmul %27, %28, %cst_20 {dimension_numbers = #tpu.dot_dimension_numbers<[1], [1], [0], [0], [0, 0, 1, 0], [], []>} : vector<8x4xf32>, vector<16x4xf32>, vector<8x16xf32> -> vector<8x16xf32>
    %cst_21 = arith.constant dense<0xFF800000> : vector<8xf32>
    %31 = vector.multi_reduction <maximumf>, %30, %cst_21 [1] : vector<8x16xf32> to vector<8xf32>
    %32 = vector.shape_cast %31 : vector<8xf32> to vector<8x1xf32>
    %33 = vector.broadcast %32 : vector<8x1xf32> to vector<8x16xf32>
    %34 = arith.subf %30, %33 : vector<8x16xf32>
    %35 = math.exp %34 : vector<8x16xf32>
    %cst_22 = arith.constant dense<0.000000e+00> : vector<8xf32>
    %36 = vector.multi_reduction <add>, %35, %cst_22 [1] : vector<8x16xf32> to vector<8xf32>
    %37 = vector.shape_cast %36 : vector<8xf32> to vector<8x1xf32>
    %38 = vector.broadcast %37 : vector<8x1xf32> to vector<8x16xf32>
    %39 = arith.divf %35, %38 : vector<8x16xf32>
    %cst_23 = arith.constant dense<0.000000e+00> : vector<8x4xf32>
    %40 = tpu.matmul %39, %29, %cst_23 {dimension_numbers = #tpu.dot_dimension_numbers<[1], [0], [0], [1], [0, 0, 1, 1], [], []>} : vector<8x16xf32>, vector<16x4xf32>, vector<8x4xf32> -> vector<8x4xf32>
    %c0_24 = arith.constant 0 : index
    %c4 = arith.constant 4 : index
    %41 = vector.load %arg9[%c0_24, %c4] : memref<8x32xf32, #tpu.memory_space<vmem>>, vector<8x4xf32>
    tpu.vector_store %arg9[%c0_24, %c4], %40 {strides = array<i32>} : memref<8x32xf32, #tpu.memory_space<vmem>>, vector<8x4xf32>,
    %42 = vector.extract_strided_slice %11 {offsets = [0, 8], sizes = [8, 4], strides = [1, 1]} : vector<8x32xf32> to vector<8x4xf32>
    %43 = vector.extract_strided_slice %7 {offsets = [0, 8], sizes = [16, 4], strides = [1, 1]} : vector<16x32xf32> to vector<16x4xf32>
    %44 = vector.extract_strided_slice %9 {offsets = [0, 8], sizes = [16, 4], strides = [1, 1]} : vector<16x32xf32> to vector<16x4xf32>
    %cst_25 = arith.constant dense<0.000000e+00> : vector<8x16xf32>
    %45 = tpu.matmul %42, %43, %cst_25 {dimension_numbers = #tpu.dot_dimension_numbers<[1], [1], [0], [0], [0, 0, 1, 0], [], []>} : vector<8x4xf32>, vector<16x4xf32>, vector<8x16xf32> -> vector<8x16xf32>
    %cst_26 = arith.constant dense<0xFF800000> : vector<8xf32>
    %46 = vector.multi_reduction <maximumf>, %45, %cst_26 [1] : vector<8x16xf32> to vector<8xf32>
    %47 = vector.shape_cast %46 : vector<8xf32> to vector<8x1xf32>
    %48 = vector.broadcast %47 : vector<8x1xf32> to vector<8x16xf32>
    %49 = arith.subf %45, %48 : vector<8x16xf32>
    %50 = math.exp %49 : vector<8x16xf32>
    %cst_27 = arith.constant dense<0.000000e+00> : vector<8xf32>
    %51 = vector.multi_reduction <add>, %50, %cst_27 [1] : vector<8x16xf32> to vector<8xf32>
    %52 = vector.shape_cast %51 : vector<8xf32> to vector<8x1xf32>
    %53 = vector.broadcast %52 : vector<8x1xf32> to vector<8x16xf32>
    %54 = arith.divf %50, %53 : vector<8x16xf32>
    %cst_28 = arith.constant dense<0.000000e+00> : vector<8x4xf32>
    %55 = tpu.matmul %54, %44, %cst_28 {dimension_numbers = #tpu.dot_dimension_numbers<[1], [0], [0], [1], [0, 0, 1, 1], [], []>} : vector<8x16xf32>, vector<16x4xf32>, vector<8x4xf32> -> vector<8x4xf32>
    %c0_29 = arith.constant 0 : index
    %c8 = arith.constant 8 : index
    %56 = vector.load %arg9[%c0_29, %c8] : memref<8x32xf32, #tpu.memory_space<vmem>>, vector<8x4xf32>
    tpu.vector_store %arg9[%c0_29, %c8], %55 {strides = array<i32>} : memref<8x32xf32, #tpu.memory_space<vmem>>, vector<8x4xf32>,
    %57 = vector.extract_strided_slice %11 {offsets = [0, 12], sizes = [8, 4], strides = [1, 1]} : vector<8x32xf32> to vector<8x4xf32>
    %58 = vector.extract_strided_slice %7 {offsets = [0, 12], sizes = [16, 4], strides = [1, 1]} : vector<16x32xf32> to vector<16x4xf32>
    %59 = vector.extract_strided_slice %9 {offsets = [0, 12], sizes = [16, 4], strides = [1, 1]} : vector<16x32xf32> to vector<16x4xf32>
    %cst_30 = arith.constant dense<0.000000e+00> : vector<8x16xf32>
    %60 = tpu.matmul %57, %58, %cst_30 {dimension_numbers = #tpu.dot_dimension_numbers<[1], [1], [0], [0], [0, 0, 1, 0], [], []>} : vector<8x4xf32>, vector<16x4xf32>, vector<8x16xf32> -> vector<8x16xf32>
    %cst_31 = arith.constant dense<0xFF800000> : vector<8xf32>
    %61 = vector.multi_reduction <maximumf>, %60, %cst_31 [1] : vector<8x16xf32> to vector<8xf32>
    %62 = vector.shape_cast %61 : vector<8xf32> to vector<8x1xf32>
    %63 = vector.broadcast %62 : vector<8x1xf32> to vector<8x16xf32>
    %64 = arith.subf %60, %63 : vector<8x16xf32>
    %65 = math.exp %64 : vector<8x16xf32>
    %cst_32 = arith.constant dense<0.000000e+00> : vector<8xf32>
    %66 = vector.multi_reduction <add>, %65, %cst_32 [1] : vector<8x16xf32> to vector<8xf32>
    %67 = vector.shape_cast %66 : vector<8xf32> to vector<8x1xf32>
    %68 = vector.broadcast %67 : vector<8x1xf32> to vector<8x16xf32>
    %69 = arith.divf %65, %68 : vector<8x16xf32>
    %cst_33 = arith.constant dense<0.000000e+00> : vector<8x4xf32>
    %70 = tpu.matmul %69, %59, %cst_33 {dimension_numbers = #tpu.dot_dimension_numbers<[1], [0], [0], [1], [0, 0, 1, 1], [], []>} : vector<8x16xf32>, vector<16x4xf32>, vector<8x4xf32> -> vector<8x4xf32>
    %c0_34 = arith.constant 0 : index
    %c12 = arith.constant 12 : index
    %71 = vector.load %arg9[%c0_34, %c12] : memref<8x32xf32, #tpu.memory_space<vmem>>, vector<8x4xf32>
    tpu.vector_store %arg9[%c0_34, %c12], %70 {strides = array<i32>} : memref<8x32xf32, #tpu.memory_space<vmem>>, vector<8x4xf32>,
    %72 = vector.extract_strided_slice %11 {offsets = [0, 16], sizes = [8, 4], strides = [1, 1]} : vector<8x32xf32> to vector<8x4xf32>
    %73 = vector.extract_strided_slice %7 {offsets = [0, 16], sizes = [16, 4], strides = [1, 1]} : vector<16x32xf32> to vector<16x4xf32>
    %74 = vector.extract_strided_slice %9 {offsets = [0, 16], sizes = [16, 4], strides = [1, 1]} : vector<16x32xf32> to vector<16x4xf32>
    %cst_35 = arith.constant dense<0.000000e+00> : vector<8x16xf32>
    %75 = tpu.matmul %72, %73, %cst_35 {dimension_numbers = #tpu.dot_dimension_numbers<[1], [1], [0], [0], [0, 0, 1, 0], [], []>} : vector<8x4xf32>, vector<16x4xf32>, vector<8x16xf32> -> vector<8x16xf32>
    %cst_36 = arith.constant dense<0xFF800000> : vector<8xf32>
    %76 = vector.multi_reduction <maximumf>, %75, %cst_36 [1] : vector<8x16xf32> to vector<8xf32>
    %77 = vector.shape_cast %76 : vector<8xf32> to vector<8x1xf32>
    %78 = vector.broadcast %77 : vector<8x1xf32> to vector<8x16xf32>
    %79 = arith.subf %75, %78 : vector<8x16xf32>
    %80 = math.exp %79 : vector<8x16xf32>
    %cst_37 = arith.constant dense<0.000000e+00> : vector<8xf32>
    %81 = vector.multi_reduction <add>, %80, %cst_37 [1] : vector<8x16xf32> to vector<8xf32>
    %82 = vector.shape_cast %81 : vector<8xf32> to vector<8x1xf32>
    %83 = vector.broadcast %82 : vector<8x1xf32> to vector<8x16xf32>
    %84 = arith.divf %80, %83 : vector<8x16xf32>
    %cst_38 = arith.constant dense<0.000000e+00> : vector<8x4xf32>
    %85 = tpu.matmul %84, %74, %cst_38 {dimension_numbers = #tpu.dot_dimension_numbers<[1], [0], [0], [1], [0, 0, 1, 1], [], []>} : vector<8x16xf32>, vector<16x4xf32>, vector<8x4xf32> -> vector<8x4xf32>
    %c0_39 = arith.constant 0 : index
    %c16 = arith.constant 16 : index
    %86 = vector.load %arg9[%c0_39, %c16] : memref<8x32xf32, #tpu.memory_space<vmem>>, vector<8x4xf32>
    tpu.vector_store %arg9[%c0_39, %c16], %85 {strides = array<i32>} : memref<8x32xf32, #tpu.memory_space<vmem>>, vector<8x4xf32>,
    %87 = vector.extract_strided_slice %11 {offsets = [0, 20], sizes = [8, 4], strides = [1, 1]} : vector<8x32xf32> to vector<8x4xf32>
    %88 = vector.extract_strided_slice %7 {offsets = [0, 20], sizes = [16, 4], strides = [1, 1]} : vector<16x32xf32> to vector<16x4xf32>
    %89 = vector.extract_strided_slice %9 {offsets = [0, 20], sizes = [16, 4], strides = [1, 1]} : vector<16x32xf32> to vector<16x4xf32>
    %cst_40 = arith.constant dense<0.000000e+00> : vector<8x16xf32>
    %90 = tpu.matmul %87, %88, %cst_40 {dimension_numbers = #tpu.dot_dimension_numbers<[1], [1], [0], [0], [0, 0, 1, 0], [], []>} : vector<8x4xf32>, vector<16x4xf32>, vector<8x16xf32> -> vector<8x16xf32>
    %cst_41 = arith.constant dense<0xFF800000> : vector<8xf32>
    %91 = vector.multi_reduction <maximumf>, %90, %cst_41 [1] : vector<8x16xf32> to vector<8xf32>
    %92 = vector.shape_cast %91 : vector<8xf32> to vector<8x1xf32>
    %93 = vector.broadcast %92 : vector<8x1xf32> to vector<8x16xf32>
    %94 = arith.subf %90, %93 : vector<8x16xf32>
    %95 = math.exp %94 : vector<8x16xf32>
    %cst_42 = arith.constant dense<0.000000e+00> : vector<8xf32>
    %96 = vector.multi_reduction <add>, %95, %cst_42 [1] : vector<8x16xf32> to vector<8xf32>
    %97 = vector.shape_cast %96 : vector<8xf32> to vector<8x1xf32>
    %98 = vector.broadcast %97 : vector<8x1xf32> to vector<8x16xf32>
    %99 = arith.divf %95, %98 : vector<8x16xf32>
    %cst_43 = arith.constant dense<0.000000e+00> : vector<8x4xf32>
    %100 = tpu.matmul %99, %89, %cst_43 {dimension_numbers = #tpu.dot_dimension_numbers<[1], [0], [0], [1], [0, 0, 1, 1], [], []>} : vector<8x16xf32>, vector<16x4xf32>, vector<8x4xf32> -> vector<8x4xf32>
    %c0_44 = arith.constant 0 : index
    %c20 = arith.constant 20 : index
    %101 = vector.load %arg9[%c0_44, %c20] : memref<8x32xf32, #tpu.memory_space<vmem>>, vector<8x4xf32>
    tpu.vector_store %arg9[%c0_44, %c20], %100 {strides = array<i32>} : memref<8x32xf32, #tpu.memory_space<vmem>>, vector<8x4xf32>,
    %102 = vector.extract_strided_slice %11 {offsets = [0, 24], sizes = [8, 4], strides = [1, 1]} : vector<8x32xf32> to vector<8x4xf32>
    %103 = vector.extract_strided_slice %7 {offsets = [0, 24], sizes = [16, 4], strides = [1, 1]} : vector<16x32xf32> to vector<16x4xf32>
    %104 = vector.extract_strided_slice %9 {offsets = [0, 24], sizes = [16, 4], strides = [1, 1]} : vector<16x32xf32> to vector<16x4xf32>
    %cst_45 = arith.constant dense<0.000000e+00> : vector<8x16xf32>
    %105 = tpu.matmul %102, %103, %cst_45 {dimension_numbers = #tpu.dot_dimension_numbers<[1], [1], [0], [0], [0, 0, 1, 0], [], []>} : vector<8x4xf32>, vector<16x4xf32>, vector<8x16xf32> -> vector<8x16xf32>
    %cst_46 = arith.constant dense<0xFF800000> : vector<8xf32>
    %106 = vector.multi_reduction <maximumf>, %105, %cst_46 [1] : vector<8x16xf32> to vector<8xf32>
    %107 = vector.shape_cast %106 : vector<8xf32> to vector<8x1xf32>
    %108 = vector.broadcast %107 : vector<8x1xf32> to vector<8x16xf32>
    %109 = arith.subf %105, %108 : vector<8x16xf32>
    %110 = math.exp %109 : vector<8x16xf32>
    %cst_47 = arith.constant dense<0.000000e+00> : vector<8xf32>
    %111 = vector.multi_reduction <add>, %110, %cst_47 [1] : vector<8x16xf32> to vector<8xf32>
    %112 = vector.shape_cast %111 : vector<8xf32> to vector<8x1xf32>
    %113 = vector.broadcast %112 : vector<8x1xf32> to vector<8x16xf32>
    %114 = arith.divf %110, %113 : vector<8x16xf32>
    %cst_48 = arith.constant dense<0.000000e+00> : vector<8x4xf32>
    %115 = tpu.matmul %114, %104, %cst_48 {dimension_numbers = #tpu.dot_dimension_numbers<[1], [0], [0], [1], [0, 0, 1, 1], [], []>} : vector<8x16xf32>, vector<16x4xf32>, vector<8x4xf32> -> vector<8x4xf32>
    %c0_49 = arith.constant 0 : index
    %c24 = arith.constant 24 : index
    %116 = vector.load %arg9[%c0_49, %c24] : memref<8x32xf32, #tpu.memory_space<vmem>>, vector<8x4xf32>
    tpu.vector_store %arg9[%c0_49, %c24], %115 {strides = array<i32>} : memref<8x32xf32, #tpu.memory_space<vmem>>, vector<8x4xf32>,
    %117 = vector.extract_strided_slice %11 {offsets = [0, 28], sizes = [8, 4], strides = [1, 1]} : vector<8x32xf32> to vector<8x4xf32>
    %118 = vector.extract_strided_slice %7 {offsets = [0, 28], sizes = [16, 4], strides = [1, 1]} : vector<16x32xf32> to vector<16x4xf32>
    %119 = vector.extract_strided_slice %9 {offsets = [0, 28], sizes = [16, 4], strides = [1, 1]} : vector<16x32xf32> to vector<16x4xf32>
    %cst_50 = arith.constant dense<0.000000e+00> : vector<8x16xf32>
    %120 = tpu.matmul %117, %118, %cst_50 {dimension_numbers = #tpu.dot_dimension_numbers<[1], [1], [0], [0], [0, 0, 1, 0], [], []>} : vector<8x4xf32>, vector<16x4xf32>, vector<8x16xf32> -> vector<8x16xf32>
    %cst_51 = arith.constant dense<0xFF800000> : vector<8xf32>
    %121 = vector.multi_reduction <maximumf>, %120, %cst_51 [1] : vector<8x16xf32> to vector<8xf32>
    %122 = vector.shape_cast %121 : vector<8xf32> to vector<8x1xf32>
    %123 = vector.broadcast %122 : vector<8x1xf32> to vector<8x16xf32>
    %124 = arith.subf %120, %123 : vector<8x16xf32>
    %125 = math.exp %124 : vector<8x16xf32>
    %cst_52 = arith.constant dense<0.000000e+00> : vector<8xf32>
    %126 = vector.multi_reduction <add>, %125, %cst_52 [1] : vector<8x16xf32> to vector<8xf32>
    %127 = vector.shape_cast %126 : vector<8xf32> to vector<8x1xf32>
    %128 = vector.broadcast %127 : vector<8x1xf32> to vector<8x16xf32>
    %129 = arith.divf %125, %128 : vector<8x16xf32>
    %cst_53 = arith.constant dense<0.000000e+00> : vector<8x4xf32>
    %130 = tpu.matmul %129, %119, %cst_53 {dimension_numbers = #tpu.dot_dimension_numbers<[1], [0], [0], [1], [0, 0, 1, 1], [], []>} : vector<8x16xf32>, vector<16x4xf32>, vector<8x4xf32> -> vector<8x4xf32>
    %c0_54 = arith.constant 0 : index
    %c28 = arith.constant 28 : index
    %131 = vector.load %arg9[%c0_54, %c28] : memref<8x32xf32, #tpu.memory_space<vmem>>, vector<8x4xf32>
    tpu.vector_store %arg9[%c0_54, %c28], %130 {strides = array<i32>} : memref<8x32xf32, #tpu.memory_space<vmem>>, vector<8x4xf32>,
    %c0_55 = arith.constant 0 : index
    %c0_56 = arith.constant 0 : index
    %132 = vector.load %arg9[%c0_55, %c0_56] : memref<8x32xf32, #tpu.memory_space<vmem>>, vector<8x32xf32>
    %c0_57 = arith.constant 0 : index
    %c0_58 = arith.constant 0 : index
    %133 = vector.load %arg6[%c0_57, %c0_58] : memref<32x32xf32, #tpu.memory_space<vmem>>, vector<32x32xf32>
    %cst_59 = arith.constant dense<0.000000e+00> : vector<8x32xf32>
    %134 = tpu.matmul %132, %133, %cst_59 {dimension_numbers = #tpu.dot_dimension_numbers<[1], [0], [0], [1], [0, 0, 1, 1], [], []>} : vector<8x32xf32>, vector<32x32xf32>, vector<8x32xf32> -> vector<8x32xf32>
    %c0_60 = arith.constant 0 : index
    %c0_61 = arith.constant 0 : index
    %135 = vector.load %arg7[%c0_60, %c0_61] : memref<1x32xf32, #tpu.memory_space<vmem>>, vector<1x32xf32>
    %136 = vector.broadcast %135 : vector<1x32xf32> to vector<8x32xf32>
    %137 = arith.addf %134, %136 : vector<8x32xf32>
    %c0_62 = arith.constant 0 : index
    %c0_63 = arith.constant 0 : index
    %c0_64 = arith.constant 0 : index
    %138 = vector.load %arg8[%c0_62, %c0_63, %c0_64] : memref<1x8x32xf32, #tpu.memory_space<vmem>>, vector<1x8x32xf32>
    %139 = vector.shape_cast %138 : vector<1x8x32xf32> to vector<8x32xf32>
    %140 = vector.shape_cast %137 : vector<8x32xf32> to vector<1x8x32xf32>
    tpu.vector_store %arg8[%c0_62, %c0_63, %c0_64], %140 {strides = array<i32>} : memref<1x8x32xf32, #tpu.memory_space<vmem>>, vector<1x8x32xf32>,
    return
  }
  func.func @transform_0(%arg0: i32) -> (i32, i32, i32) {
    %c0_i32 = arith.constant 0 : i32
    %c0_i32_0 = arith.constant 0 : i32
    %c0_i32_1 = arith.constant 0 : i32
    return %arg0, %c0_i32, %c0_i32_0 : i32, i32, i32
  }
  func.func @transform_1(%arg0: i32) -> (i32, i32, i32) {
    %c0_i32 = arith.constant 0 : i32
    %c0_i32_0 = arith.constant 0 : i32
    %c0_i32_1 = arith.constant 0 : i32
    return %arg0, %c0_i32, %c0_i32_0 : i32, i32, i32
  }
  func.func @transform_2(%arg0: i32) -> (i32, i32) {
    %c0_i32 = arith.constant 0 : i32
    %c0_i32_0 = arith.constant 0 : i32
    %c0_i32_1 = arith.constant 0 : i32
    return %c0_i32, %c0_i32_0 : i32, i32
  }
  func.func @transform_3(%arg0: i32) -> (i32, i32) {
    %c0_i32 = arith.constant 0 : i32
    %c0_i32_0 = arith.constant 0 : i32
    %c0_i32_1 = arith.constant 0 : i32
    return %c0_i32, %c0_i32_0 : i32, i32
  }
  func.func @transform_4(%arg0: i32) -> (i32, i32) {
    %c0_i32 = arith.constant 0 : i32
    %c0_i32_0 = arith.constant 0 : i32
    %c0_i32_1 = arith.constant 0 : i32
    return %c0_i32, %c0_i32_0 : i32, i32
  }
  func.func @transform_5(%arg0: i32) -> (i32, i32) {
    %c0_i32 = arith.constant 0 : i32
    %c0_i32_0 = arith.constant 0 : i32
    %c0_i32_1 = arith.constant 0 : i32
    return %c0_i32, %c0_i32_0 : i32, i32
  }
  func.func @transform_6(%arg0: i32) -> (i32, i32) {
    %c0_i32 = arith.constant 0 : i32
    %c0_i32_0 = arith.constant 0 : i32
    %c0_i32_1 = arith.constant 0 : i32
    return %c0_i32, %c0_i32_0 : i32, i32
  }
  func.func @transform_7(%arg0: i32) -> (i32, i32, i32) {
    %c0_i32 = arith.constant 0 : i32
    %c0_i32_0 = arith.constant 0 : i32
    %c0_i32_1 = arith.constant 0 : i32
    return %arg0, %c0_i32, %c0_i32_0 : i32, i32, i32
  }
}

</mosaic_0001>

<bundles_post_ra>
// kernel: custom_cross_attention_forward.1
= control target key start
LH: loop header
LB: loop body
LE: loop exit
PB: predicated region body
PF: predicated region fallthrough
CT: control target
= control target key end

     0   :  { %12 = vsyncpa [#allocation4], 0  ;;  %s1874_s0 = inlined_call_operand.vmem [shape: f32[2,8,32], index: 0, kind: input, shape index: {}]   ;;  %s1875_s1 = inlined_call_operand.vmem [shape: f32[2,16,32], index: 1, kind: input, shape index: {}]   ;;  %s1876_s2 = inlined_call_operand.vmem [shape: f32[32,32], index: 2, kind: input, shape index: {}]   ;;  %s1877_s3 = inlined_call_operand.vmem [shape: f32[32,32], index: 3, kind: input, shape index: {}]   ;;  %s1878_s4 = inlined_call_operand.vmem [shape: f32[32,32], index: 4, kind: input, shape index: {}]   ;;  %s1879_s5 = inlined_call_operand.vmem [shape: f32[32,32], index: 5, kind: input, shape index: {}]   ;;  %s1880_s6 = inlined_call_operand.vmem [shape: f32[1,32], index: 6, kind: input, shape index: {}]   ;;  %s1881_s7 = inlined_call_operand.hbm [shape: f32[2,8,32], index: 7, kind: output, shape index: {}]  }
   0x1   :  { %14 = vsyncpa [#allocation4 + $0x1], 0  ;;  %s1514_s24 = smov 0   ;;  %s1516_s25 = smov 0  }
   0x2   :  { %s1518_s26 = smov 0   ;;  %s1520_s27 = smov 0  }
   0x3 LB: > { %s1535_s28 = sadd.s32 4294967295, %s1458_s27   ;;  %s1224_s29 = sadd.s32 4294967294, %s1458_s27   ;;  %s1458_s27 = sphi %s1520_s27, %s1895_s27   ;;  %s1454_s26 = sphi %s1518_s26, %s1894_s26   ;;  %s1450_s25 = sphi %s1516_s25, %s1893_s25   ;;  %s1446_s24 = sphi %s1514_s24, %s1892_s24  }
   0x4   : > { %s1539_s30 = sadd.s32 1, %s1458_s27   ;;  %s184_s8 = sadd.s32 1, %s1454_s26 }
   0x5   : > { %s181_s9 = ssub.s32 %s1458_s27, %s1539_s30  ;;  %p194_p0 = scmp.ne.s32.totalorder %s1454_s26, %s1450_s25 }
   0x6   : > { %p182_p1 = scmp.eq.s32.totalorder %s181_s9, 0  ;;  %p195_p2 = scmp.eq.s32.totalorder %s1535_s28, 1 }
   0x7   : > { %p200_p3 = scmp.ne.s32.totalorder %s1450_s25, %s1446_s24  ;;  %p201_p4 = scmp.eq.s32.totalorder %s1224_s29, 1 }
   0x8   : > { %s1550_s10 = scalar_select %p182_p1, %s1454_s26, %s184_s8  }
   0x9   : > { %p1552_p5 = por %p195_p2, %p194_p0  ;;  %p1556_p6 = por %p201_p4, %p200_p3 }
   0xa   : > { %p1227_p7 = scmp.ge.s32.totalorder %s1458_s27, 1  ;;  %p249_p8 = scmp.lt.s32.totalorder %s1458_s27, 3 }
   0xc   : > { %p250_p9 = pnand %p1227_p7, %p249_p8 }
   0xd   : > { %p285_p10 = scmp.lt.s32.totalorder (!%p250_p9), %s1535_s28, 1  ;;  %s1460_s29 = smov (!%p250_p9), 120  }
   0xe   : > { %253 = sbr.rel (%p250_p9) target bundleno = 1106 (0x452), region = 48  ;;  %s1462_s9 = smov (!%p250_p9), 112  }
   0xf   : > { %s1463_s13 = smov (!%p250_p9), 116   ;;  %s1464_s14 = smov (!%p250_p9), 108  }
  0x10   : > { %s1465_s15 = smov (!%p250_p9), 104  }
  0x13   : > { %v300_v0 = vld [vmem:[%s1876_s2 + $0x18] sm:$0xff]  ;;  %v299_v2 = vld [vmem:[%s1876_s2 + $0x10] sm:$0xff]  ;;  %v298_v4 = vld [vmem:[%s1876_s2 + $0x8] sm:$0xff]  ;;  %s286_s8 = scalar_select %p285_p10, %s1535_s28, 1  ;;  %vm301_vm0 = vcmask 261120   ;;  %vm386_vm1 = vcmask 31744  }
  0x14   : > { %v328_v1 = vld [vmem:[%s1877_s3 + $0x18] sm:$0xff]  ;;  %317 = vmatpush.msra.mxu0 %v300_v0  ;;  %v327_v3 = vld [vmem:[%s1877_s3 + $0x10] sm:$0xff]  ;;  %v326_v5 = vld [vmem:[%s1877_s3 + $0x8] sm:$0xff]  ;;  %vm416_vm2 = vcmask 130048  }
  0x15   : > { %347 = vmatpush.msra.mxu1 %v328_v1  ;;  %v297_v6 = vld [vmem:[%s1876_s2] sm:$0xff]  ;;  %s1229_s16 = sshll.u32 %s286_s8, 3  ;;  %s1274_s17 = sshll.u32 %s286_s8, 4  ;;  %v361_v24 = vld [vmem:[%s1878_s4 + $0x18] sm:$0xff]  ;;  %v360_v25 = vld [vmem:[%s1878_s4 + $0x10] sm:$0xff] }
  0x16   : > { %318 = vmatpush.msra.mxu0 %v299_v2  ;;  %v325_v7 = vld [vmem:[%s1877_s3] sm:$0xff]  ;;  %s288_s20 = scalar_lea.vmem %s1874_s0, %s1229_s16  ;;  %s293_s23 = scalar_lea.vmem %s1875_s1, %s1274_s17  ;;  %374 = vmatpush.msra.mxu2 %v361_v24  ;;  %v359_v27 = vld [vmem:[%s1878_s4 + $0x8] sm:$0xff] }
  0x17   : > { %348 = vmatpush.msra.mxu1 %v327_v3  ;;  %v294_v8 = vld [vmem:[%s288_s20] sm:$0xff]  ;;  %v1599_v10 = vld [vmem:[%s293_s23 + $0x8] sm:$0xff]  ;;  %s1461_s8 = smov 124   ;;  %s1466_s16 = smov 100  }
  0x18   : > { %319 = vmatpush.msra.mxu0 %v298_v4  ;;  %v1594_v9 = vld [vmem:[%s293_s23] sm:$0xff]  ;;  %375 = vmatpush.msra.mxu2 %v360_v25 }
  0x19   : > { %349 = vmatpush.msra.mxu1 %v326_v5  ;;  %v358_v29 = vld [vmem:[%s1878_s4] sm:$0xff] }
  0x1a   : > { %320 = vmatpush.msra.mxu0 %v297_v6  ;;  %376 = vmatpush.msra.mxu2 %v359_v27 }
  0x1b   : > { %350 = vmatpush.msra.mxu1 %v325_v7  ;;  %1232 = vmatmul.msk.f32.vlgmr.msra.gmra.mxu0 %vm301_vm0, %v294_v8 }
  0x1c   : > { %1233 = vmatmul.msk.f32.vlgmr.msra.gmra.mxu1 %vm301_vm0, %v1594_v9  ;;  %377 = vmatpush.msra.mxu2 %v358_v29 }
  0x1d   : > { %1235 = vmatmul.msk.f32.vlgmr.msra.gmra.mxu2 %vm301_vm0, %v1594_v9 }
  0x24   : > { %1234 = vmatmul.msk.f32.gmra.mxu1 %vm301_vm0, %v1599_v10 }
  0x25   : > { %1236 = vmatmul.msk.f32.gmra.mxu2 %vm301_vm0, %v1599_v10 }
  0x98   : > { %v322_v11 = vpop.f32.mrf.mxu0 }
  0x99   : > { %v352_v12 = vpop.f32.mrf.mxu1  ;;  %v385_v13 = vmul.f32 0.5, %v322_v11 }
  0x9a   : > { %560 = vrot.lane.b32.xlu2 %v352_v12, %s1460_s29  ;;  %467 = vrot.lane.b32.xlu0 %v352_v12, %s1461_s8 }
  0x9b   : > { %465 = vrot.lane.b32.xlu1 %v385_v13, %s1461_s8 }
  0xa0   : > { %v379_v48 = vpop.f32.mrf.mxu2 }
  0xa1   : > { %v355_v14 = vpop.f32.mrf.mxu1 }
  0xa2   : > { %742 = vrot.lane.b32.xlu2 %v352_v12, %s1462_s9  ;;  %651 = vrot.lane.b32.xlu0 %v352_v12, %s1463_s13 }
  0xa3   : > { %1237 = vmatpush.xpose.msk.msra.mxu3 %vm386_vm1, %v355_v14  ;;  %558 = vrot.lane.b32.xlu1 %v385_v13, %s1460_s29 }
  0xa7   : > { %1238 = vmatpush.xpose.msk.msra.mxu3 %vm386_vm1, %v352_v12 }
  0xa8   : > { %v382_v54 = vpop.f32.mrf.mxu2 }
  0xa9   : > { %458 = vmatpush.msrb.mxu0 %v382_v54  ;;  %v1679_v63 = vpack.i.bf16 %v379_v48, %v382_v54 }
  0xaa   : > { %1239 = vmatmul.msk.f32.vlgmr.msra.gmra.mxu3 %vm386_vm1, %v385_v13  ;;  %469 = vrot.lane.b32.xlu0 %v355_v14, %s1461_s8 }
  0xab   : > { %649 = vrot.lane.b32.xlu2 %v385_v13, %s1463_s13  ;;  %740 = vrot.lane.b32.xlu1 %v385_v13, %s1462_s9 }
  0xac   : > { %459 = vmatpush.msrb.mxu0 %v379_v48 }
  0xb2   : > { %833 = vrot.lane.b32.xlu0 %v352_v12, %s1464_s14 }
  0xb3   : > { %653 = vrot.lane.b32.xlu2 %v355_v14, %s1463_s13  ;;  %562 = vrot.lane.b32.xlu1 %v355_v14, %s1460_s29 }
  0xba   : > { %744 = vrot.lane.b32.xlu0 %v355_v14, %s1462_s9 }
  0xbb   : > { %831 = vrot.lane.b32.xlu2 %v385_v13, %s1464_s14  ;;  %835 = vrot.lane.b32.xlu1 %v355_v14, %s1464_s14 }
  0xc2   : > { %926 = vrot.lane.b32.xlu0 %v355_v14, %s1465_s15 }
  0xc3   : > { %924 = vrot.lane.b32.xlu2 %v352_v12, %s1465_s15  ;;  %1017 = vrot.lane.b32.xlu1 %v355_v14, %s1466_s16 }
  0xca   : > { %1015 = vrot.lane.b32.xlu0 %v352_v12, %s1466_s16 }
  0xcb   : > { %1013 = vrot.lane.b32.xlu2 %v385_v13, %s1466_s16  ;;  %922 = vrot.lane.b32.xlu1 %v385_v13, %s1465_s15 }
  0xf4   : > { %v561_v15 = vpop.permute.xlu2 %560 }
  0xfc   : > { %v743_v17 = vpop.permute.xlu2 %742 }
 0x105   : > { %v650_v21 = vpop.permute.xlu2 %649 }
 0x10c   : > { %v468_v16 = vpop.permute.xlu0 %467 }
 0x10d   : > { %v466_v18 = vpop.permute.xlu1 %465  ;;  %v654_v26 = vpop.permute.xlu2 %653 }
 0x114   : > { %v652_v19 = vpop.permute.xlu0 %651 }
 0x115   : > { %v559_v20 = vpop.permute.xlu1 %558  ;;  %v832_v31 = vpop.permute.xlu2 %831 }
 0x11c   : > { %v470_v22 = vpop.permute.xlu0 %469 }
 0x11d   : > { %1241 = vmatpush.xpose.msk.msrb.mxu3 %vm386_vm1, %v470_v22  ;;  %v741_v23 = vpop.permute.xlu1 %740  ;;  %v925_v37 = vpop.permute.xlu2 %924 }
 0x121   : > { %1242 = vmatpush.xpose.msk.msrb.mxu3 %vm386_vm1, %v468_v16 }
 0x124   : > { %v834_v28 = vpop.permute.xlu0 %833  ;;  %1243 = vmatmul.msk.f32.vlgmr.msrb.gmra.mxu3 %vm386_vm1, %v466_v18 }
 0x125   : > { %1249 = vmatpush.xpose.msk.msra.mxu3 %vm386_vm1, %v654_v26  ;;  %v563_v30 = vpop.permute.xlu1 %562  ;;  %v1014_v41 = vpop.permute.xlu2 %1013 }
 0x126   : > { %1245 = vmatpush.xpose.msk.msrb.mxu1 %vm386_vm1, %v563_v30 }
 0x129   : > { %1250 = vmatpush.xpose.msk.msra.mxu3 %vm386_vm1, %v652_v19 }
 0x12a   : > { %1246 = vmatpush.xpose.msk.msrb.mxu1 %vm386_vm1, %v561_v15 }
 0x12c   : > { %v745_v32 = vpop.permute.xlu0 %744  ;;  %1251 = vmatmul.msk.f32.vlgmr.msra.gmra.mxu3 %vm386_vm1, %v650_v21 }
 0x12d   : > { %v413_v33 = vpop.f32.mrf.mxu3  ;;  %1247 = vmatmul.msk.f32.vlgmr.msrb.gmra.mxu1 %vm386_vm1, %v559_v20  ;;  %v836_v34 = vpop.permute.xlu1 %835 }
 0x12e   : > { %1253 = vmatpush.xpose.msk.msra.mxu1 %vm386_vm1, %v745_v32  ;;  %v417_v35 = vsel %vm416_vm2, %v413_v33, -inf  ;;  %1257 = vmatpush.xpose.msk.msrb.mxu3 %vm386_vm1, %v836_v34 }
 0x12f   : > { %418 = vmax.xlane.f32.xlu0 %v417_v35 }
 0x132   : > { %1254 = vmatpush.xpose.msk.msra.mxu1 %vm386_vm1, %v743_v17  ;;  %1258 = vmatpush.xpose.msk.msrb.mxu3 %vm386_vm1, %v834_v28 }
 0x134   : > { %v927_v36 = vpop.permute.xlu0 %926 }
 0x135   : > { %1255 = vmatmul.msk.f32.vlgmr.msra.gmra.mxu1 %vm386_vm1, %v741_v23  ;;  %v1018_v38 = vpop.permute.xlu1 %1017  ;;  %1259 = vmatmul.msk.f32.vlgmr.msrb.gmra.mxu3 %vm386_vm1, %v832_v31 }
 0x136   : > { %1261 = vmatpush.xpose.msk.msrb.mxu1 %vm386_vm1, %v927_v36  ;;  %1265 = vmatpush.xpose.msk.msra.mxu3 %vm386_vm1, %v1018_v38 }
 0x13a   : > { %1262 = vmatpush.xpose.msk.msrb.mxu1 %vm386_vm1, %v925_v37 }
 0x13c   : > { %v1016_v39 = vpop.permute.xlu0 %1015 }
 0x13d   : > { %1266 = vmatpush.xpose.msk.msra.mxu3 %vm386_vm1, %v1016_v39  ;;  %v923_v40 = vpop.permute.xlu1 %922 }
 0x13e   : > { %1263 = vmatmul.msk.f32.vlgmr.msrb.gmra.mxu1 %vm386_vm1, %v923_v40 }
 0x140   : > { %1267 = vmatmul.msk.f32.vlgmr.msra.gmra.mxu3 %vm386_vm1, %v1014_v41 }
 0x1a2   : > { %v419_v42 = vpop.xlane.xlu0 %418 }
 0x1a3   : > { %v420_v43 = vsub.f32 %v413_v33, %v419_v42 }
 0x1a5   : > { %v421_v44 = vmul.f32 1.442695, %v420_v43 }
 0x1a7   : > { %1364 = vpow2.f32 %v421_v44  ;;  %v494_v45 = vpop.f32.mrf.mxu3 }
 0x1a8   : > { %v497_v46 = vsel %vm416_vm2, %v494_v45, -inf }
 0x1a9   : > { %498 = vmax.xlane.f32.xlu1 %v497_v46 }
 0x1aa   : > { %v587_v47 = vpop.f32.mrf.mxu1 }
 0x1ab   : > { %v590_v49 = vsel %vm416_vm2, %v587_v47, -inf }
 0x1ac   : > { %591 = vmax.xlane.f32.xlu2 %v590_v49 }
 0x1ad   : > { %v1667_v50 = vpop.eup %1364 }
 0x1ae   : > { %v423_v51 = vsel %vm416_vm2, %v1667_v50, 0.0 }
 0x1af   : > { %v678_v52 = vpop.f32.mrf.mxu3 }
 0x1b0   : > { %v681_v55 = vsel %vm416_vm2, %v678_v52, -inf }
 0x1b1   : > { %424 = vadd.xlane.f32.xlu1 %v423_v51 }
 0x1b2   : > { %v769_v53 = vpop.f32.mrf.mxu1 }
 0x1b3   : > { %v772_v56 = vsel %vm416_vm2, %v769_v53, -inf }
 0x1b4   : > { %682 = vmax.xlane.f32.xlu2 %v681_v55  ;;  %773 = vmax.xlane.f32.xlu0 %v772_v56 }
 0x1b8   : > { %v860_v57 = vpop.f32.mrf.mxu3 }
 0x1b9   : > { %v863_v58 = vsel %vm416_vm2, %v860_v57, -inf }
 0x1ba   : > { %864 = vmax.xlane.f32.xlu1 %v863_v58 }
 0x1bb   : > { %v951_v59 = vpop.f32.mrf.mxu1 }
 0x1bc   : > { %v954_v60 = vsel %vm416_vm2, %v951_v59, -inf }
 0x1bd   : > { %955 = vmax.xlane.f32.xlu2 %v954_v60 }
 0x1c3   : > { %v1675_v61 = vpop.f32.mrf.mxu3 }
 0x1c4   : > { %v1045_v62 = vsel %vm416_vm2, %v1675_v61, -inf }
 0x1c5   : > { %1046 = vmax.xlane.f32.xlu0 %v1045_v62 }
 0x1d3   : > { %1329 = vrot.lane.b32.xlu1 %v1679_v63, %s1461_s8  ;;  %s1468_s8 = smov 8  }
 0x1d9   : > { %1334 = vrot.lane.b32.xlu0 %v1679_v63, %s1460_s29  ;;  %s1467_s29 = smov 4  }
 0x21c   : > { %v499_v0 = vpop.xlane.xlu1 %498 }
 0x21d   : > { %v500_v1 = vsub.f32 %v494_v45, %v499_v0 }
 0x21f   : > { %v501_v2 = vmul.f32 1.442695, %v500_v1  ;;  %v592_v3 = vpop.xlane.xlu2 %591 }
 0x220   : > { %v593_v4 = vsub.f32 %v587_v47, %v592_v3 }
 0x221   : > { %1366 = vpow2.f32 %v501_v2 }
 0x222   : > { %v594_v5 = vmul.f32 1.442695, %v593_v4 }
 0x224   : > { %v425_v6 = vpop.xlane.xlu1 %424  ;;  %1368 = vpow2.f32 %v594_v5 }
 0x225   : > { %1370 = vrcp.f32 %v425_v6  ;;  %v437_v22 = vand.u32 2147483648, %v425_v6  ;;  %v435_v24 = vand.u32 2147483647, %v425_v6  ;;  %vm431_vm4 = vweird.f32 %v425_v6 }
 0x227   : > { %v1685_v7 = vpop.eup %1366  ;;  %v683_v8 = vpop.xlane.xlu2 %682  ;;  %v438_v31 = vor.u32 1.1754944e-38, %v437_v22  ;;  %vm436_vm6 = vcmp.eq.f32.partialorder %v435_v24, 8.507059e+37 }
 0x228   : > { %v774_v9 = vpop.xlane.xlu0 %773  ;;  %v503_v10 = vsel %vm416_vm2, %v1685_v7, 0.0  ;;  %v684_v11 = vsub.f32 %v678_v52, %v683_v8 }
 0x229   : > { %v775_v12 = vsub.f32 %v769_v53, %v774_v9  ;;  %504 = vadd.xlane.f32.xlu2 %v503_v10 }
 0x22a   : > { %v1689_v13 = vpop.eup %1368  ;;  %v685_v14 = vmul.f32 1.442695, %v684_v11 }
 0x22b   : > { %v776_v15 = vmul.f32 1.442695, %v775_v12  ;;  %v1371_v16 = vpop.eup %1370  ;;  %v596_v17 = vsel %vm416_vm2, %v1689_v13, 0.0 }
 0x22c   : > { %v427_v18 = vmul.f32 %v1371_v16, %v425_v6  ;;  %1372 = vpow2.f32 %v685_v14  ;;  %597 = vadd.xlane.f32.xlu0 %v596_v17  ;;  %vm432_vm3 = vweird.f32 %v1371_v16 }
 0x22d   : > { %1374 = vpow2.f32 %v776_v15  ;;  %v865_v19 = vpop.xlane.xlu1 %864  ;;  %vm433_vm5 = vmor %vm431_vm4, %vm432_vm3 }
 0x22e   : > { %v428_v20 = vsub.f32 1.0, %v427_v18  ;;  %v866_v21 = vsub.f32 %v860_v57, %v865_v19 }
 0x230   : > { %v429_v23 = vmul.f32 %v1371_v16, %v428_v20  ;;  %v867_v25 = vmul.f32 1.442695, %v866_v21  ;;  %v956_v26 = vpop.xlane.xlu2 %955 }
 0x231   : > { %v957_v27 = vsub.f32 %v951_v59, %v956_v26 }
 0x232   : > { %v1693_v28 = vpop.eup %1372  ;;  %v430_v29 = vadd.f32 %v1371_v16, %v429_v23  ;;  %1376 = vpow2.f32 %v867_v25 }
 0x233   : > { %v1695_v30 = vpop.eup %1374  ;;  %v958_v32 = vmul.f32 1.442695, %v957_v27  ;;  %v687_v33 = vsel %vm416_vm2, %v1693_v28, 0.0 }
 0x234   : > { %688 = vadd.xlane.f32.xlu1 %v687_v33  ;;  %v778_v34 = vsel %vm416_vm2, %v1695_v30, 0.0  ;;  %v434_v35 = vsel %vm433_vm5, %v1371_v16, %v430_v29 }
 0x235   : > { %1378 = vpow2.f32 %v958_v32  ;;  %779 = vadd.xlane.f32.xlu2 %v778_v34  ;;  %v439_v36 = vsel %vm436_vm6, %v438_v31, %v434_v35 }
 0x236   : > { %v440_v37 = vmul.f32 %v1667_v50, %v439_v36 }
 0x238   : > { %v1047_v38 = vpop.xlane.xlu0 %1046  ;;  %v1702_v39 = vpop.eup %1376  ;;  %1240 = vmatmul.msk.f32.vlgmr.msrb.gmra.mxu0 %vm416_vm2, %v440_v37 }
 0x239   : > { %v1048_v40 = vsub.f32 %v1675_v61, %v1047_v38  ;;  %v869_v41 = vsel %vm416_vm2, %v1702_v39, 0.0 }
 0x23a   : > { %870 = vadd.xlane.f32.xlu0 %v869_v41 }
 0x23b   : > { %v1049_v42 = vmul.f32 1.442695, %v1048_v40  ;;  %v1708_v43 = vpop.eup %1378 }
 0x23c   : > { %v960_v44 = vsel %vm416_vm2, %v1708_v43, 0.0 }
 0x23d   : > { %1380 = vpow2.f32 %v1049_v42  ;;  %961 = vadd.xlane.f32.xlu2 %v960_v44  ;;  %v1106_v42 = vld [vmem:[%s1879_s5 + $0x8] sm:$0xff] }
 0x243   : > { %v1712_v45 = vpop.eup %1380 }
 0x244   : > { %v1051_v46 = vsel %vm416_vm2, %v1712_v45, 0.0 }
 0x245   : > { %1052 = vadd.xlane.f32.xlu2 %v1051_v46  ;;  %v1330_v47 = vpop.permute.xlu1 %1329 }
 0x246   : > { %v1332_v48 = vunpack.i.h.bf16 %v1330_v47  ;;  %v1331_v49 = vunpack.i.l.bf16 %v1330_v47 }
 0x248   : > { %546 = vmatpush.msra.mxu0 %v1331_v49 }
 0x24a   : > { %547 = vmatpush.msra.mxu0 %v1332_v48 }
 0x24b   : > { %v1335_v50 = vpop.permute.xlu0 %1334 }
 0x24c   : > { %v1336_v51 = vunpack.i.l.bf16 %v1335_v50  ;;  %v1337_v52 = vunpack.i.h.bf16 %v1335_v50 }
 0x24d   : > { %1344 = vrot.lane.b32.xlu1 %v1679_v63, %s1462_s9  ;;  %s1469_s9 = smov 12  }
 0x24e   : > { %637 = vmatpush.msrb.mxu2 %v1336_v51  ;;  %1349 = vrot.lane.b32.xlu0 %v1679_v63, %s1464_s14  ;;  %s1471_s14 = smov 20  }
 0x250   : > { %638 = vmatpush.msrb.mxu2 %v1337_v52 }
 0x255   : > { %1354 = vrot.lane.b32.xlu1 %v1679_v63, %s1465_s15  ;;  %s1472_s15 = smov 24  }
 0x256   : > { %1359 = vrot.lane.b32.xlu0 %v1679_v63, %s1466_s16  ;;  %s1473_s16 = smov 28  }
 0x25d   : > { %1339 = vrot.lane.b32.xlu2 %v1679_v63, %s1463_s13  ;;  %s1470_s13 = smov 16  }
 0x29c   : > { %v505_v53 = vpop.xlane.xlu2 %504 }
 0x29d   : > { %1382 = vrcp.f32 %v505_v53  ;;  %v517_v59 = vand.u32 2147483648, %v505_v53  ;;  %v515_v61 = vand.u32 2147483647, %v505_v53  ;;  %vm511_vm8 = vweird.f32 %v505_v53 }
 0x29f   : > { %v598_v54 = vpop.xlane.xlu0 %597  ;;  %v518_v3 = vor.u32 1.1754944e-38, %v517_v59  ;;  %vm516_vm10 = vcmp.eq.f32.partialorder %v515_v61, 8.507059e+37 }
 0x2a0   : > { %1384 = vrcp.f32 %v598_v54  ;;  %v610_v8 = vand.u32 2147483648, %v598_v54  ;;  %vm604_vm12 = vweird.f32 %v598_v54  ;;  %v608_v10 = vand.u32 2147483647, %v598_v54 }
 0x2a2   : > { %v611_v18 = vor.u32 1.1754944e-38, %v610_v8  ;;  %vm609_vm14 = vcmp.eq.f32.partialorder %v608_v10, 8.507059e+37 }
 0x2a3   : > { %v1383_v55 = vpop.eup %1382 }
 0x2a4   : > { %v507_v56 = vmul.f32 %v1383_v55, %v505_v53  ;;  %vm512_vm7 = vweird.f32 %v1383_v55 }
 0x2a5   : > { %vm513_vm9 = vmor %vm511_vm8, %vm512_vm7 }
 0x2a6   : > { %v508_v57 = vsub.f32 1.0, %v507_v56  ;;  %v1385_v58 = vpop.eup %1384 }
 0x2a7   : > { %v600_v62 = vmul.f32 %v1385_v58, %v598_v54  ;;  %v1726_v0 = vpop.xlane.xlu1 %688  ;;  %vm605_vm11 = vweird.f32 %v1385_v58 }
 0x2a8   : > { %v509_v60 = vmul.f32 %v1383_v55, %v508_v57  ;;  %1386 = vrcp.f32 %v1726_v0  ;;  %v1729_v1 = vpop.xlane.xlu2 %779  ;;  %vm606_vm13 = vmor %vm604_vm12, %vm605_vm11  ;;  %vm695_vm15 = vweird.f32 %v1726_v0  ;;  %v699_v37 = vand.u32 2147483647, %v1726_v0 }
 0x2a9   : > { %v601_v2 = vsub.f32 1.0, %v600_v62  ;;  %1388 = vrcp.f32 %v1729_v1  ;;  %v701_v38 = vand.u32 2147483648, %v1726_v0  ;;  %v790_v40 = vand.u32 2147483647, %v1729_v1 }
 0x2aa   : > { %v510_v63 = vadd.f32 %v1383_v55, %v509_v60  ;;  %v792_v41 = vand.u32 2147483648, %v1729_v1  ;;  %vm786_vm5 = vweird.f32 %v1729_v1  ;;  %vm700_vm7 = vcmp.eq.f32.partialorder %v699_v37, 8.507059e+37 }
 0x2ab   : > { %v602_v5 = vmul.f32 %v1385_v58, %v601_v2  ;;  %v702_v51 = vor.u32 1.1754944e-38, %v701_v38  ;;  %vm791_vm8 = vcmp.eq.f32.partialorder %v790_v40, 8.507059e+37  ;;  %v1108_v40 = vld [vmem:[%s1879_s5 + $0x18] sm:$0xff] }
 0x2ac   : > { %v514_v4 = vsel %vm513_vm9, %v1383_v55, %v510_v63  ;;  %v793_v52 = vor.u32 1.1754944e-38, %v792_v41  ;;  %v1107_v41 = vld [vmem:[%s1879_s5 + $0x10] sm:$0xff]  ;;  %1128 = vmatpush.msra.mxu1 %v1108_v40 }
 0x2ad   : > { %v519_v6 = vsel %vm516_vm10, %v518_v3, %v514_v4  ;;  %v603_v9 = vadd.f32 %v1385_v58, %v602_v5  ;;  %v1732_v11 = vpop.xlane.xlu0 %870 }
 0x2ae   : > { %v520_v12 = vmul.f32 %v1685_v7, %v519_v6  ;;  %v1387_v14 = vpop.eup %1386  ;;  %1390 = vrcp.f32 %v1732_v11  ;;  %vm877_vm9 = vweird.f32 %v1732_v11  ;;  %v881_v54 = vand.u32 2147483647, %v1732_v11  ;;  %1129 = vmatpush.msra.mxu1 %v1107_v41 }
 0x2af   : > { %v1389_v15 = vpop.eup %1388  ;;  %v691_v16 = vmul.f32 %v1387_v14, %v1726_v0  ;;  %v607_v17 = vsel %vm606_vm13, %v1385_v58, %v603_v9  ;;  %vm696_vm3 = vweird.f32 %v1387_v14  ;;  %v883_v63 = vand.u32 2147483648, %v1732_v11 }
 0x2b0   : > { %1244 = vmatmul.msk.f32.vlgmr.msra.gmra.mxu0 %vm416_vm2, %v520_v12  ;;  %v782_v19 = vmul.f32 %v1389_v15, %v1729_v1  ;;  %v1739_v20 = vpop.xlane.xlu2 %961  ;;  %v612_v22 = vsel %vm609_vm14, %v611_v18, %v607_v17  ;;  %vm787_vm4 = vweird.f32 %v1389_v15  ;;  %1130 = vmatpush.msra.mxu1 %v1106_v42 }
 0x2b1   : > { %1392 = vrcp.f32 %v1739_v20  ;;  %v692_v21 = vsub.f32 1.0, %v691_v16  ;;  %v613_v23 = vmul.f32 %v1689_v13, %v612_v22  ;;  %vm1766_vm6 = vmor %vm786_vm5, %vm787_vm4  ;;  %v974_v2 = vand.u32 2147483648, %v1739_v20 }
 0x2b2   : > { %v783_v7 = vsub.f32 1.0, %v782_v19  ;;  %vm968_vm13 = vweird.f32 %v1739_v20  ;;  %v972_v6 = vand.u32 2147483647, %v1739_v20 }
 0x2b3   : > { %1248 = vmatmul.msk.f32.vlgmr.msrb.gmra.mxu2 %vm416_vm2, %v613_v23  ;;  %v693_v26 = vmul.f32 %v1387_v14, %v692_v21 }
 0x2b4   : > { %v1743_v24 = vpop.eup %1390  ;;  %v784_v27 = vmul.f32 %v1389_v15, %v783_v7 }
 0x2b5   : > { %v461_v25 = vpop.f32.mrf.mxu0  ;;  %v873_v29 = vmul.f32 %v1743_v24, %v1732_v11  ;;  %v694_v13 = vadd.f32 %v1387_v14, %v693_v26  ;;  %vm878_vm10 = vweird.f32 %v1743_v24 }
 0x2b6   : > { %464 = vst.msk [vmem:[#allocation2] sm:$0xff] %vm386_vm1, %v461_v25  ;;  %v785_v34 = vadd.f32 %v1389_v15, %v784_v27  ;;  %vm1761_vm1 = vmor %vm695_vm15, %vm696_vm3  ;;  %vm882_vm15 = vcmp.eq.f32.partialorder %v881_v54, 8.507059e+37  ;;  %vm973_vm3 = vcmp.eq.f32.partialorder %v972_v6, 8.507059e+37 }
 0x2b7   : > { %v1749_v31 = vpop.eup %1392  ;;  %v874_v35 = vsub.f32 1.0, %v873_v29  ;;  %v698_v46 = vsel %vm1761_vm1, %v1387_v14, %v694_v13  ;;  %vm1792_vm12 = vmor %vm877_vm9, %vm878_vm10  ;;  %vm829_vm9 = vcmask 162944   ;;  %vm920_vm10 = vcmask 195744  }
 0x2b8   : > { %v964_v32 = vmul.f32 %v1749_v31, %v1739_v20  ;;  %v1753_v33 = vpop.xlane.xlu2 %1052  ;;  %v789_v47 = vsel %vm1766_vm6, %v1389_v15, %v785_v34  ;;  %v703_v58 = vsel %vm700_vm7, %v702_v51, %v698_v46  ;;  %vm969_vm11 = vweird.f32 %v1749_v31  ;;  %v1105_v46 = vld [vmem:[%s1879_s5] sm:$0xff] }
 0x2b9   : > { %1394 = vrcp.f32 %v1753_v33  ;;  %v875_v48 = vmul.f32 %v1743_v24, %v874_v35  ;;  %v794_v59 = vsel %vm791_vm8, %v793_v52, %v789_v47  ;;  %v704_v9 = vmul.f32 %v1693_v28, %v703_v58  ;;  %vm1800_vm14 = vmor %vm968_vm13, %vm969_vm11  ;;  %1131 = vmatpush.msra.mxu1 %v1105_v46 }
 0x2ba   : > { %v965_v36 = vsub.f32 1.0, %v964_v32  ;;  %v795_v8 = vmul.f32 %v1695_v30, %v794_v59  ;;  %v884_v28 = vor.u32 1.1754944e-38, %v883_v63  ;;  %v975_v30 = vor.u32 1.1754944e-38, %v974_v2 }
 0x2bb   : > { %v876_v62 = vadd.f32 %v1743_v24, %v875_v48  ;;  %vm1059_vm1 = vweird.f32 %v1753_v33  ;;  %v1063_v26 = vand.u32 2147483647, %v1753_v33  ;;  %vm647_vm7 = vcmask 97344  }
 0x2bc   : > { %v966_v49 = vmul.f32 %v1749_v31, %v965_v36  ;;  %vm738_vm8 = vcmask 130144   ;;  %vm1011_vm11 = vcmask 228544  }
 0x2bd   : > { %v880_v11 = vsel %vm1792_vm12, %v1743_v24, %v876_v62  ;;  %v1065_v24 = vand.u32 2147483648, %v1753_v33  ;;  %vm1064_vm6 = vcmp.eq.f32.partialorder %v1063_v26, 8.507059e+37  ;;  %vm1102_vm12 = vcmask 261344  }
 0x2be   : > { %v967_v0 = vadd.f32 %v1749_v31, %v966_v49  ;;  %v885_v20 = vsel %vm882_vm15, %v884_v28, %v880_v11 }
 0x2bf   : > { %v1776_v50 = vpop.eup %1394  ;;  %v1345_v53 = vpop.permute.xlu1 %1344  ;;  %v886_v29 = vmul.f32 %v1702_v39, %v885_v20  ;;  %v1066_v32 = vor.u32 1.1754944e-38, %v1065_v24 }
 0x2c0   : > { %v1055_v55 = vmul.f32 %v1776_v50, %v1753_v33  ;;  %v1340_v56 = vpop.permute.xlu2 %1339  ;;  %v1350_v57 = vpop.permute.xlu0 %1349  ;;  %v1346_v60 = vunpack.i.l.bf16 %v1345_v53  ;;  %v1347_v3 = vunpack.i.h.bf16 %v1345_v53  ;;  %v971_v14 = vsel %vm1800_vm14, %v1749_v31, %v967_v0  ;;  %v1363_v53 = vld [vmem:[%s1880_s6] ss:$0 sm:$0xff] }
 0x2c1   : > { %v1341_v61 = vunpack.i.l.bf16 %v1340_v56  ;;  %v1342_v4 = vunpack.i.h.bf16 %v1340_v56  ;;  %v1351_v12 = vunpack.i.l.bf16 %v1350_v57  ;;  %v1352_v16 = vunpack.i.h.bf16 %v1350_v57 }
 0x2c2   : > { %v1056_v1 = vsub.f32 1.0, %v1055_v55  ;;  %819 = vmatpush.msra.mxu2 %v1346_v60  ;;  %v976_v21 = vsel %vm973_vm3, %v975_v30, %v971_v14  ;;  %vm1060_vm4 = vweird.f32 %v1776_v50 }
 0x2c3   : > { %728 = vmatpush.msrb.mxu0 %v1341_v61  ;;  %v977_v27 = vmul.f32 %v1708_v43, %v976_v21  ;;  %vm1061_vm5 = vmor %vm1059_vm1, %vm1060_vm4 }
 0x2c4   : > { %820 = vmatpush.msra.mxu2 %v1347_v3  ;;  %v1057_v15 = vmul.f32 %v1776_v50, %v1056_v1 }
 0x2c5   : > { %729 = vmatpush.msrb.mxu0 %v1342_v4  ;;  %1256 = vmatmul.msk.f32.vlgmr.msra.gmra.mxu2 %vm416_vm2, %v795_v8 }
 0x2c6   : > { %1252 = vmatmul.msk.f32.vlgmr.msrb.gmra.mxu0 %vm416_vm2, %v704_v9  ;;  %v1058_v22 = vadd.f32 %v1776_v50, %v1057_v15 }
 0x2c7   : > { %910 = vmatpush.msra.mxu0 %v1351_v12  ;;  %v1355_v17 = vpop.permute.xlu1 %1354 }
 0x2c8   : > { %v1356_v18 = vunpack.i.l.bf16 %v1355_v17  ;;  %v1360_v19 = vpop.permute.xlu0 %1359  ;;  %v1357_v23 = vunpack.i.h.bf16 %v1355_v17  ;;  %v1062_v31 = vsel %vm1061_vm5, %v1776_v50, %v1058_v22 }
 0x2c9   : > { %v1361_v7 = vunpack.i.l.bf16 %v1360_v19  ;;  %911 = vmatpush.msra.mxu0 %v1352_v16  ;;  %v1362_v25 = vunpack.i.h.bf16 %v1360_v19  ;;  %v1067_v13 = vsel %vm1064_vm6, %v1066_v32, %v1062_v31 }
 0x2ca   : > { %1001 = vmatpush.msrb.mxu2 %v1356_v18  ;;  %v1068_v34 = vmul.f32 %v1712_v45, %v1067_v13 }
 0x2cb   : > { %1092 = vmatpush.msrb.mxu0 %v1361_v7 }
 0x2cc   : > { %1002 = vmatpush.msrb.mxu2 %v1357_v23 }
 0x2cd   : > { %1093 = vmatpush.msrb.mxu0 %v1362_v25  ;;  %1264 = vmatmul.msk.f32.vlgmr.msrb.gmra.mxu2 %vm416_vm2, %v977_v27 }
 0x2ce   : > { %1260 = vmatmul.msk.f32.vlgmr.msra.gmra.mxu0 %vm416_vm2, %v886_v29 }
 0x2d6   : > { %1268 = vmatmul.msk.f32.vlgmr.msrb.gmra.mxu0 %vm416_vm2, %v1068_v34  ;;  %vm556_vm2 = vcmask 64544  }
 0x32d   : > { %v549_v33 = vpop.f32.mrf.mxu0 }
 0x32e   : > { %553 = vrot.lane.b32.xlu1 %v549_v33, %s1467_s29 }
 0x336   : > { %v640_v43 = vpop.f32.mrf.mxu2 }
 0x337   : > { %644 = vrot.lane.b32.xlu0 %v640_v43, %s1468_s8  ;;  %s282_s8 = sand.u32 1, %s1450_s25  }
 0x338   : > { %s1138_s23 = scalar_lea.sflag [#allocation4], %s282_s8 }
 0x343   : > { %v731_v39 = vpop.f32.mrf.mxu0 }
 0x344   : > { %735 = vrot.lane.b32.xlu2 %v731_v39, %s1469_s9  ;;  %s1228_s9 = sshll.u32 %s282_s8, 3 }
 0x345   : > { %s284_s20 = scalar_lea.vmem [#allocation3], %s1228_s9  ;;  %s1416_s9 = scalar_lea.hbm %s1881_s7, 16 }
 0x346   : > { %s1150_s21 = sshll.u32 %s284_s20, 4  ;;  %s1151_s21 = int_to_ptr.vmem [resolvable:$true] %s1150_s21 }
 0x348   : > { %v822_v35 = vpop.f32.mrf.mxu2 }
 0x349   : > { %826 = vrot.lane.b32.xlu1 %v822_v35, %s1470_s13  ;;  %s1271_s13 = sshll.u32 %s1535_s28, 3 }
 0x34b   : > { %v913_v36 = vpop.f32.mrf.mxu0 }
 0x34c   : > { %917 = vrot.lane.b32.xlu0 %v913_v36, %s1471_s14 }
 0x350   : > { %v1004_v37 = vpop.f32.mrf.mxu2 }
 0x351   : > { %1008 = vrot.lane.b32.xlu2 %v1004_v37, %s1472_s15 }
 0x353   : > { %v1095_v45 = vpop.f32.mrf.mxu0 }
 0x354   : > { %1099 = vrot.lane.b32.xlu1 %v1095_v45, %s1473_s16  ;;  %s1148_s16 = scalar_lea.hbm %s1881_s7, %s1271_s13 }
 0x355   : > { %s1152_s22 = sshll.u32 %s1148_s16, 4  ;;  %s1153_s22 = int_to_ptr.hbm [resolvable:$true] %s1152_s22 }
 0x356   : > { %s1410_s28 = sshra.s32 %s1153_s22, 4  ;;  %s1411_s28 = int_to_ptr.hbm [resolvable:$true] %s1410_s28 }
 0x357   : > { %s1412_s17 = scalar_lea.hbm %s1411_s28, 8  ;;  %p1417_p0 = scmp.lt.s32.totalorder %s1411_s28, %s1881_s7 }
 0x358   : > { %p1413_p11 = scmp.ne.s32.totalorder %s1411_s28, %s1412_s17  ;;  %p1418_p1 = scmp.lt.s32.totalorder %s1416_s9, %s1412_s17 }
 0x35a   : > { %p1414_p12 = pnand %p1413_p11, %p1552_p5  ;;  %p1419_p2 = por %p1418_p1, %p1417_p0 }
 0x35c   : > { %p1415_p13 = pneg %p1414_p12 }
 0x35e   : > { %p1420_p3 = pnand %p1419_p2, %p1415_p13 }
 0x39e   : > { %v736_v47 = vpop.permute.xlu2 %735 }
 0x3a0   : > { %v554_v38 = vpop.permute.xlu1 %553 }
 0x3a1   : > { %557 = vst.msk [vmem:[#allocation2] sm:$0xff] %vm556_vm2, %v554_v38 }
 0x3a9   : > { %v645_v44 = vpop.permute.xlu0 %644 }
 0x3aa   : > { %648 = vst.msk [vmem:[#allocation2] sm:$0xff] %vm647_vm7, %v645_v44 }
 0x3ab   : > { %739 = vst.msk [vmem:[#allocation2] sm:$0xff] %vm738_vm8, %v736_v47  ;;  %v1009_v50 = vpop.permute.xlu2 %1008 }
 0x3bb   : > { %v827_v48 = vpop.permute.xlu1 %826 }
 0x3bc   : > { %830 = vst.msk [vmem:[#allocation2] sm:$0xff] %vm829_vm9, %v827_v48 }
 0x3be   : > { %v918_v49 = vpop.permute.xlu0 %917 }
 0x3bf   : > { %921 = vst.msk [vmem:[#allocation2] sm:$0xff] %vm920_vm10, %v918_v49 }
 0x3c0   : > { %1012 = vst.msk [vmem:[#allocation2] sm:$0xff] %vm1011_vm11, %v1009_v50 }
 0x3c6   : > { %v1100_v51 = vpop.permute.xlu1 %1099 }
 0x3c7   : > { %1103 = vst.msk [vmem:[#allocation2] sm:$0xff] %vm1102_vm12, %v1100_v51 }
 0x3ce   : > { %v1104_v52 = vld [vmem:[#allocation2] sm:$0xff] }
 0x3cf   : > { %1269 = vmatmul.msk.f32.vlgmr.msra.gmra.mxu1 %vm301_vm0, %v1104_v52 }
 0x44c   : > { %v1133_v54 = vpop.f32.mrf.mxu1 }
 0x44d   : > { %v1134_v55 = vadd.f32 %v1363_v53, %v1133_v54 }
 0x44f   : > { %1136 = vst.msk [vmem:[%s284_s20] sm:$0xff] %vm301_vm0, %v1134_v55 }
 0x450   : > { %1423 = shalt.err (!%p1420_p3)
}
 0x451   : > { %1275 = dma.vmem_to_hbm [thread:$0]  (%p1552_p5), %s1151_s21, 128, %s1153_s22, %s1138_s23  }
 0x452 PF: > { %p1281_p4 = scmp.ge.s32.totalorder %s1458_s27, 2  ;;  %s1164_s8 = sand.u32 1, %s1446_s24  }
 0x453   : > { %s1165_s16 = scalar_lea.sflag [#allocation4], %s1164_s8 }
 0x454   : > { %p1278_p7 = pnand %p1281_p4, %p1556_p6 }
 0x456   : > { %p1279_p8 = pneg %p1278_p7 }
 0x458   : > { %1441 = dma.done.wait (%p1279_p8), %s1165_s16, 128  }
 0x459   : > { %1443 = vsyncadd (%p1279_p8), %s1165_s16, 4294967168  ;;  %p17_p9 = scmp.ge.s32.totalorder %s1539_s30, 4   ;;  %s1892_s24 = smov %s1450_s25 }
 0x45a   : > { %s1893_s25 = smov %s1454_s26  ;;  %s1894_s26 = smov %s1550_s10 }
 0x45b   : > { %s1895_s27 = smov %s1539_s30  ;;  %19 = sbr.rel (!%p17_p9) target bundleno = 3 (0x3), region = 86 }
 0x460   :  { %1171 = vsyncpa [#allocation4], 1 }
 0x461   :  { %1173 = vsyncpa [#allocation4 + $0x1], 1 }

</bundles_post_ra>
